<compile_context>
chip_gen: v7x
topology: tpu7x:2x2x1
jax: 0.10.0
libtpu: 0.0.40
codegen_flags: <defaults>
</compile_context>

<pallas_src>
import functools

import jax
import jax.numpy as jnp
from jax.experimental import pallas as pl
from jax.experimental.pallas import tpu as pltpu

LANES = 128


def _sublane_multiple(dtype) -> int:
    itemsize = jnp.dtype(dtype).itemsize
    return {4: 8, 2: 16, 1: 32}.get(itemsize, 8)


def _default_num_slices() -> int:
    # 2 TensorCores per chip only on v7x; v5e/v6e are single-TC, where a 2-wide
    # "parallel" axis is just a sequential outer loop (doubled epilogues).
    try:
        kind = jax.devices()[0].device_kind.lower()
    except Exception:  # pragma: no cover
        return 1
    return 2 if "v7" in kind else 1


def _masked_mse_kernel(x_ref, t_ref, sum_ref, cnt_ref, acc_sq_ref, acc_cnt_ref,
                       *, valid_rows):
    c = pl.program_id(0)                 # slice axis ("parallel")
    i = pl.program_id(1)                 # reduction axis ("arbitrary")
    steps = pl.num_programs(1)

    @pl.when(i == 0)
    def _init():
        acc_sq_ref[...] = jnp.zeros_like(acc_sq_ref)
        acc_cnt_ref[...] = jnp.zeros_like(acc_cnt_ref)

    block_rows = x_ref.shape[0]
    blk = c * steps + i                  # logical (unclamped) block index
    # Scalar-ALU test: does this logical block extend past the real rows?
    # True for (a) the partial last block and (b) overflow steps of a ragged
    # slice (whose index_map re-maps to an already-processed block).
    is_tail = (blk + 1) * block_rows > valid_rows

    x = x_ref[...].astype(jnp.float32)
    t = t_ref[...].astype(jnp.float32)

    def _accumulate(valid):
        diff = jnp.where(valid, x - t, jnp.float32(0.0))
        # Reduce the whole tile down to a single (8, 128) vreg with plain VPU
        # adds, then do exactly one read-modify-write of the tiny accumulator.
        d2 = (diff * diff).reshape(-1, 8, LANES)
        cnt = valid.astype(jnp.float32).reshape(-1, 8, LANES)
        acc_sq_ref[...] += d2.sum(axis=0)
        acc_cnt_ref[...] += cnt.sum(axis=0)

    @pl.when(jnp.logical_not(is_tail))
    def _fast():
        # Hot path: no iota, no row compare — just the (t != 0) mask.
        _accumulate(t != 0.0)

    @pl.when(is_tail)
    def _tail():
        row_in_block = jax.lax.broadcasted_iota(jnp.int32, (block_rows, LANES), 0)
        global_row = blk * block_rows + row_in_block
        _accumulate((global_row < valid_rows) & (t != 0.0))

    @pl.when(i == steps - 1)
    def _finish():
        # One cross-lane reduce (XLU) per slice, written to SMEM scalars.
        sum_ref[0, 0] = jnp.sum(acc_sq_ref[...])
        cnt_ref[0, 0] = jnp.sum(acc_cnt_ref[...])


def masked_mse_loss(x, target, *, tile_rows=None,
                    target_block_bytes=1 << 20, num_slices=None):
    """Equivalent of MSELoss().forward(input, target) with reduction='mean'."""
    assert x.shape == target.shape, "input and target must have the same shape"
    numel = x.size

    flat_x = x.reshape(-1)
    flat_t = target.reshape(-1)

    sub = max(_sublane_multiple(x.dtype), _sublane_multiple(target.dtype))
    itemsize = max(jnp.dtype(x.dtype).itemsize, jnp.dtype(target.dtype).itemsize)

    # Reshape to a lane-dense [rows, 128] slab with rows a multiple of the
    # sublane packing (so in-kernel (.., 8, 128) reshapes are layout no-ops).
    chunk = LANES * sub
    padded = pl.cdiv(numel, chunk) * chunk
    if padded != numel:
        # Rare path; padded target entries are 0 -> masked out by (t != 0).
        flat_x = jnp.pad(flat_x, (0, padded - numel))
        flat_t = jnp.pad(flat_t, (0, padded - numel))
    rows = padded // LANES
    x2d = flat_x.reshape(rows, LANES)
    t2d = flat_t.reshape(rows, LANES)

    # Constant-byte tiles (~1 MiB per input regardless of dtype).
    if tile_rows is None:
        tile_rows = target_block_bytes // (LANES * itemsize)
    tile_rows = max(sub, (tile_rows // sub) * sub)
    block_rows = rows if rows <= tile_rows else tile_rows

    num_blocks = pl.cdiv(rows, block_rows)
    if num_slices is None:
        num_slices = _default_num_slices()
    num_slices = max(1, min(num_slices, num_blocks))
    steps = pl.cdiv(num_blocks, num_slices)
    grid = (num_slices, steps)

    def in_index_map(c, i):
        # Clamp to the last real block *owned by this slice*: overflow steps then
        # repeat the previous step's block index, so the pipeline elides the DMA
        # and the in-kernel row mask zeroes their contribution.
        last = jnp.minimum((c + 1) * steps, num_blocks) - 1
        return (jnp.minimum(c * steps + i, last), 0)

    kernel = functools.partial(_masked_mse_kernel, valid_rows=rows)

    sum_sq, cnt = pl.pallas_call(
        kernel,
        out_shape=(
            jax.ShapeDtypeStruct((num_slices, 1), jnp.float32),
            jax.ShapeDtypeStruct((num_slices, 1), jnp.float32),
        ),
        grid_spec=pltpu.PrefetchScalarGridSpec(
            num_scalar_prefetch=0,
            grid=grid,
            in_specs=[
                pl.BlockSpec((block_rows, LANES), in_index_map),
                pl.BlockSpec((block_rows, LANES), in_index_map),
            ],
            out_specs=(
                pl.BlockSpec((1, 1), lambda c, i: (c, 0), memory_space=pltpu.SMEM),
                pl.BlockSpec((1, 1), lambda c, i: (c, 0), memory_space=pltpu.SMEM),
            ),
            scratch_shapes=[
                pltpu.VMEM((8, LANES), jnp.float32),   # sum of squares partials
                pltpu.VMEM((8, LANES), jnp.float32),   # nonzero-count partials
            ],
        ),
        compiler_params=pltpu.CompilerParams(
            dimension_semantics=("parallel", "arbitrary"),
            # 2 inputs x 2 buffers x ~1 MiB + 8 KiB scratch + f32 temporaries:
            # 32 MiB is v6e/v7x's default scoped VMEM and gives v5e headroom.
            vmem_limit_bytes=32 * 1024 * 1024,
        ),
    )(x2d, t2d)

    total_sq = jnp.sum(sum_sq)
    total_cnt = jnp.sum(cnt)
    # torch: mse_loss(masked_input, target, 'mean') / count_nonzero(target)
    # TODO(synk): counts are accumulated in f32 (exact below ~2^24 per lane slot,
    # i.e. ~17G total elements); switch to int32 partials beyond that.
    return (total_sq / jnp.float32(numel)) / total_cnt


def _reference(x, target):
    mask = target == 0
    x = jnp.where(mask, 0.0, x)
    sq = (x - target).astype(jnp.float32) ** 2
    return (jnp.sum(sq) / x.size) / jnp.sum(~mask)


if __name__ == "__main__":
    key = jax.random.PRNGKey(0)
    k1, k2, k3 = jax.random.split(key, 3)

    # Base case: NCHW [2, 4, 16, 16] f32 with zeros sprinkled into the target.
    B, C, H, W = 2, 4, 16, 16
    x = jax.random.normal(k1, (B, C, H, W), dtype=jnp.float32)
    t = jax.random.normal(k2, (B, C, H, W), dtype=jnp.float32)
    zero_mask = jax.random.bernoulli(k3, p=0.25, shape=(B, C, H, W))
    t = jnp.where(zero_mask, 0.0, t)
    ref = _reference(x, t)

    # 1) Default path (single large block, fast un-masked body).
    loss = jax.block_until_ready(masked_mse_loss(x, t))
    assert jnp.allclose(loss, ref, rtol=1e-5, atol=1e-6), (loss, ref)

    # 2) Multi-block path (reduction axis with several steps).
    loss2 = jax.block_until_ready(masked_mse_loss(x, t, tile_rows=8))
    assert jnp.allclose(loss2, ref, rtol=1e-5, atol=1e-6), (loss2, ref)

    # 3) Odd block count with two slices: exercises the per-slice clamped
    #    index map (DMA-elided overflow step) + logical-row masking.
    x3 = jax.random.normal(k1, (2, 4, 16, 24), dtype=jnp.float32)
    t3 = jax.random.normal(k2, (2, 4, 16, 24), dtype=jnp.float32)
    t3 = jnp.where(jax.random.bernoulli(k3, 0.25, (2, 4, 16, 24)), 0.0, t3)
    ref3 = _reference(x3, t3)
    loss3 = jax.block_until_ready(masked_mse_loss(x3, t3, tile_rows=8, num_slices=2))
    assert jnp.allclose(loss3, ref3, rtol=1e-5, atol=1e-6), (loss3, ref3)

    # 3b) Partial last block (rows % block_rows != 0): tail garbage-row masking.
    loss3b = jax.block_until_ready(masked_mse_loss(x3, t3, tile_rows=16))
    assert jnp.allclose(loss3b, ref3, rtol=1e-5, atol=1e-6), (loss3b, ref3)

    # 4) bf16 inputs in native dtype (in-kernel f32 cast) + wrapper pad path.
    xb = x3.astype(jnp.bfloat16)
    tb = t3.astype(jnp.bfloat16)
    refb = _reference(xb.astype(jnp.float32), tb.astype(jnp.float32))
    lossb = jax.block_until_ready(masked_mse_loss(xb, tb, tile_rows=16))
    assert jnp.allclose(lossb, refb, rtol=1e-4, atol=1e-6), (lossb, refb)

    # 5) Ragged numel (not a multiple of 128*sublanes) -> small pad path.
    x5 = jax.random.normal(k1, (3, 5, 7), dtype=jnp.float32)
    t5 = jax.random.normal(k2, (3, 5, 7), dtype=jnp.float32)
    t5 = jnp.where(jax.random.bernoulli(k3, 0.25, (3, 5, 7)), 0.0, t5)
    ref5 = _reference(x5, t5)
    loss5 = jax.block_until_ready(masked_mse_loss(x5, t5))
    assert jnp.allclose(loss5, ref5, rtol=1e-5, atol=1e-6), (loss5, ref5)

    print("KERNEL_OK")
</pallas_src>

<mosaic_0001>
module attributes {stable_mosaic.version = 11 : i64} {
  func.func @_masked_mse_kernel(%arg0: i32, %arg1: i32, %arg2: memref<16x128xf32, #tpu.memory_space<vmem>>, %arg3: memref<16x128xf32, #tpu.memory_space<vmem>>, %arg4: memref<1x1xf32, #tpu.memory_space<smem>>, %arg5: memref<1x1xf32, #tpu.memory_space<smem>>, %arg6: memref<8x128xf32, #tpu.memory_space<vmem>>, %arg7: memref<8x128xf32, #tpu.memory_space<vmem>>) attributes {dimension_semantics = [#tpu.dimension_semantics<parallel>, #tpu.dimension_semantics<arbitrary>], iteration_bounds = array<i64: 1, 1>, scalar_prefetch = 0 : i64, scratch_operands = 2 : i64, tpu.core_type = #tpu.core_type<tc>, window_params = [{transform_indices = @transform_0, window_bounds = array<i64: 16, 128>}, {transform_indices = @transform_1, window_bounds = array<i64: 16, 128>}, {transform_indices = @transform_2, window_bounds = array<i64: 1, 1>}, {transform_indices = @transform_3, window_bounds = array<i64: 1, 1>}]} {
    %c0_i32 = arith.constant 0 : i32
    %0 = arith.cmpi eq, %arg1, %c0_i32 : i32
    %1 = arith.extui %0 : i1 to i32
    %c0_i32_0 = arith.constant 0 : i32
    %2 = arith.cmpi ne, %1, %c0_i32_0 : i32
    scf.if %2 {
      %cst = arith.constant 0.000000e+00 : f32
      %18 = vector.broadcast %cst : f32 to vector<8x128xf32>
      %c0_10 = arith.constant 0 : index
      %c0_11 = arith.constant 0 : index
      %19 = vector.load %arg6[%c0_10, %c0_11] : memref<8x128xf32, #tpu.memory_space<vmem>>, vector<8x128xf32>
      tpu.vector_store %arg6[%c0_10, %c0_11], %18 {strides = array<i32>} : memref<8x128xf32, #tpu.memory_space<vmem>>, vector<8x128xf32>,
      %cst_12 = arith.constant 0.000000e+00 : f32
      %20 = vector.broadcast %cst_12 : f32 to vector<8x128xf32>
      %c0_13 = arith.constant 0 : index
      %c0_14 = arith.constant 0 : index
      %21 = vector.load %arg7[%c0_13, %c0_14] : memref<8x128xf32, #tpu.memory_space<vmem>>, vector<8x128xf32>
      tpu.vector_store %arg7[%c0_13, %c0_14], %20 {strides = array<i32>} : memref<8x128xf32, #tpu.memory_space<vmem>>, vector<8x128xf32>,
    } else {
    }
    %c1_i32 = arith.constant 1 : i32
    %3 = arith.muli %arg0, %c1_i32 : i32
    %4 = arith.addi %3, %arg1 : i32
    %c1_i32_1 = arith.constant 1 : i32
    %5 = arith.addi %4, %c1_i32_1 : i32
    %c16_i32 = arith.constant 16 : i32
    %6 = arith.muli %5, %c16_i32 : i32
    %c16_i32_2 = arith.constant 16 : i32
    %7 = arith.cmpi sgt, %6, %c16_i32_2 : i32
    %c0 = arith.constant 0 : index
    %c0_3 = arith.constant 0 : index
    %8 = vector.load %arg2[%c0, %c0_3] : memref<16x128xf32, #tpu.memory_space<vmem>>, vector<16x128xf32>
    %c0_4 = arith.constant 0 : index
    %c0_5 = arith.constant 0 : index
    %9 = vector.load %arg3[%c0_4, %c0_5] : memref<16x128xf32, #tpu.memory_space<vmem>>, vector<16x128xf32>
    %true = arith.constant true
    %10 = arith.xori %7, %true : i1
    %11 = arith.extui %10 : i1 to i32
    %c0_i32_6 = arith.constant 0 : i32
    %12 = arith.cmpi ne, %11, %c0_i32_6 : i32
    scf.if %12 {
      %cst = arith.constant 0.000000e+00 : f32
      %18 = vector.broadcast %cst : f32 to vector<16x128xf32>
      %19 = arith.cmpf one, %9, %18 : vector<16x128xf32>
      %20 = arith.subf %8, %9 : vector<16x128xf32>
      %cst_10 = arith.constant 0.000000e+00 : f32
      %21 = vector.broadcast %cst_10 : f32 to vector<16x128xf32>
      %22 = arith.select %19, %20, %21 : vector<16x128xi1>, vector<16x128xf32>
      %23 = arith.mulf %22, %22 : vector<16x128xf32>
      %24 = vector.shape_cast %23 : vector<16x128xf32> to vector<2x8x128xf32>
      %25 = arith.extui %19 : vector<16x128xi1> to vector<16x128xi32>
      %26 = arith.sitofp %25 : vector<16x128xi32> to vector<16x128xf32>
      %27 = vector.shape_cast %26 : vector<16x128xf32> to vector<2x8x128xf32>
      %c0_11 = arith.constant 0 : index
      %c0_12 = arith.constant 0 : index
      %28 = vector.load %arg6[%c0_11, %c0_12] : memref<8x128xf32, #tpu.memory_space<vmem>>, vector<8x128xf32>
      %cst_13 = arith.constant dense<0.000000e+00> : vector<8x128xf32>
      %29 = vector.multi_reduction <add>, %24, %cst_13 [0] : vector<2x8x128xf32> to vector<8x128xf32>
      %30 = arith.addf %28, %29 : vector<8x128xf32>
      %c0_14 = arith.constant 0 : index
      %c0_15 = arith.constant 0 : index
      %31 = vector.load %arg6[%c0_14, %c0_15] : memref<8x128xf32, #tpu.memory_space<vmem>>, vector<8x128xf32>
      tpu.vector_store %arg6[%c0_14, %c0_15], %30 {strides = array<i32>} : memref<8x128xf32, #tpu.memory_space<vmem>>, vector<8x128xf32>,
      %c0_16 = arith.constant 0 : index
      %c0_17 = arith.constant 0 : index
      %32 = vector.load %arg7[%c0_16, %c0_17] : memref<8x128xf32, #tpu.memory_space<vmem>>, vector<8x128xf32>
      %cst_18 = arith.constant dense<0.000000e+00> : vector<8x128xf32>
      %33 = vector.multi_reduction <add>, %27, %cst_18 [0] : vector<2x8x128xf32> to vector<8x128xf32>
      %34 = arith.addf %32, %33 : vector<8x128xf32>
      %c0_19 = arith.constant 0 : index
      %c0_20 = arith.constant 0 : index
      %35 = vector.load %arg7[%c0_19, %c0_20] : memref<8x128xf32, #tpu.memory_space<vmem>>, vector<8x128xf32>
      tpu.vector_store %arg7[%c0_19, %c0_20], %34 {strides = array<i32>} : memref<8x128xf32, #tpu.memory_space<vmem>>, vector<8x128xf32>,
    } else {
    }
    %13 = arith.extui %7 : i1 to i32
    %c0_i32_7 = arith.constant 0 : i32
    %14 = arith.cmpi ne, %13, %c0_i32_7 : i32
    scf.if %14 {
      %18 = tpu.iota {dimensions = array<i32: 0>} : vector<16x128xi32>
      %c16_i32_10 = arith.constant 16 : i32
      %19 = arith.muli %4, %c16_i32_10 : i32
      %20 = vector.broadcast %19 : i32 to vector<16x128xi32>
      %21 = arith.addi %20, %18 : vector<16x128xi32>
      %c16_i32_11 = arith.constant 16 : i32
      %22 = vector.broadcast %c16_i32_11 : i32 to vector<16x128xi32>
      %23 = arith.cmpi slt, %21, %22 : vector<16x128xi32>
      %cst = arith.constant 0.000000e+00 : f32
      %24 = vector.broadcast %cst : f32 to vector<16x128xf32>
      %25 = arith.cmpf one, %9, %24 : vector<16x128xf32>
      %26 = arith.andi %23, %25 : vector<16x128xi1>
      %27 = arith.subf %8, %9 : vector<16x128xf32>
      %cst_12 = arith.constant 0.000000e+00 : f32
      %28 = vector.broadcast %cst_12 : f32 to vector<16x128xf32>
      %29 = arith.select %26, %27, %28 : vector<16x128xi1>, vector<16x128xf32>
      %30 = arith.mulf %29, %29 : vector<16x128xf32>
      %31 = vector.shape_cast %30 : vector<16x128xf32> to vector<2x8x128xf32>
      %32 = arith.extui %26 : vector<16x128xi1> to vector<16x128xi32>
      %33 = arith.sitofp %32 : vector<16x128xi32> to vector<16x128xf32>
      %34 = vector.shape_cast %33 : vector<16x128xf32> to vector<2x8x128xf32>
      %c0_13 = arith.constant 0 : index
      %c0_14 = arith.constant 0 : index
      %35 = vector.load %arg6[%c0_13, %c0_14] : memref<8x128xf32, #tpu.memory_space<vmem>>, vector<8x128xf32>
      %cst_15 = arith.constant dense<0.000000e+00> : vector<8x128xf32>
      %36 = vector.multi_reduction <add>, %31, %cst_15 [0] : vector<2x8x128xf32> to vector<8x128xf32>
      %37 = arith.addf %35, %36 : vector<8x128xf32>
      %c0_16 = arith.constant 0 : index
      %c0_17 = arith.constant 0 : index
      %38 = vector.load %arg6[%c0_16, %c0_17] : memref<8x128xf32, #tpu.memory_space<vmem>>, vector<8x128xf32>
      tpu.vector_store %arg6[%c0_16, %c0_17], %37 {strides = array<i32>} : memref<8x128xf32, #tpu.memory_space<vmem>>, vector<8x128xf32>,
      %c0_18 = arith.constant 0 : index
      %c0_19 = arith.constant 0 : index
      %39 = vector.load %arg7[%c0_18, %c0_19] : memref<8x128xf32, #tpu.memory_space<vmem>>, vector<8x128xf32>
      %cst_20 = arith.constant dense<0.000000e+00> : vector<8x128xf32>
      %40 = vector.multi_reduction <add>, %34, %cst_20 [0] : vector<2x8x128xf32> to vector<8x128xf32>
      %41 = arith.addf %39, %40 : vector<8x128xf32>
      %c0_21 = arith.constant 0 : index
      %c0_22 = arith.constant 0 : index
      %42 = vector.load %arg7[%c0_21, %c0_22] : memref<8x128xf32, #tpu.memory_space<vmem>>, vector<8x128xf32>
      tpu.vector_store %arg7[%c0_21, %c0_22], %41 {strides = array<i32>} : memref<8x128xf32, #tpu.memory_space<vmem>>, vector<8x128xf32>,
    } else {
    }
    %c0_i32_8 = arith.constant 0 : i32
    %15 = arith.cmpi eq, %arg1, %c0_i32_8 : i32
    %16 = arith.extui %15 : i1 to i32
    %c0_i32_9 = arith.constant 0 : i32
    %17 = arith.cmpi ne, %16, %c0_i32_9 : i32
    scf.if %17 {
      %c0_10 = arith.constant 0 : index
      %c0_11 = arith.constant 0 : index
      %18 = vector.load %arg6[%c0_10, %c0_11] : memref<8x128xf32, #tpu.memory_space<vmem>>, vector<8x128xf32>
      %19 = vector.shape_cast %18 : vector<8x128xf32> to vector<1x8x128xf32>
      %cst = arith.constant dense<0.000000e+00> : vector<1xf32>
      %20 = vector.multi_reduction <add>, %19, %cst [1, 2] : vector<1x8x128xf32> to vector<1xf32>
      %21 = vector.shape_cast %20 : vector<1xf32> to vector<1x1x1xf32>
      %22 = vector.extract %21[0, 0, 0] : f32 from vector<1x1x1xf32>
      %c0_12 = arith.constant 0 : index
      %c0_13 = arith.constant 0 : index
      %23 = memref.load %arg4[%c0_12, %c0_13] : memref<1x1xf32, #tpu.memory_space<smem>>
      memref.store %22, %arg4[%c0_12, %c0_13] : memref<1x1xf32, #tpu.memory_space<smem>>
      %c0_14 = arith.constant 0 : index
      %c0_15 = arith.constant 0 : index
      %24 = vector.load %arg7[%c0_14, %c0_15] : memref<8x128xf32, #tpu.memory_space<vmem>>, vector<8x128xf32>
      %25 = vector.shape_cast %24 : vector<8x128xf32> to vector<1x8x128xf32>
      %cst_16 = arith.constant dense<0.000000e+00> : vector<1xf32>
      %26 = vector.multi_reduction <add>, %25, %cst_16 [1, 2] : vector<1x8x128xf32> to vector<1xf32>
      %27 = vector.shape_cast %26 : vector<1xf32> to vector<1x1x1xf32>
      %28 = vector.extract %27[0, 0, 0] : f32 from vector<1x1x1xf32>
      %c0_17 = arith.constant 0 : index
      %c0_18 = arith.constant 0 : index
      %29 = memref.load %arg5[%c0_17, %c0_18] : memref<1x1xf32, #tpu.memory_space<smem>>
      memref.store %28, %arg5[%c0_17, %c0_18] : memref<1x1xf32, #tpu.memory_space<smem>>
    } else {
    }
    return
  }
  func.func @transform_0(%arg0: i32, %arg1: i32) -> (i32, i32) {
    %c1_i32 = arith.constant 1 : i32
    %0 = arith.addi %arg0, %c1_i32 : i32
    %c1_i32_0 = arith.constant 1 : i32
    %1 = arith.muli %0, %c1_i32_0 : i32
    %c1_i32_1 = arith.constant 1 : i32
    %2 = arith.minsi %1, %c1_i32_1 : i32
    %c1_i32_2 = arith.constant 1 : i32
    %3 = arith.subi %2, %c1_i32_2 : i32
    %c1_i32_3 = arith.constant 1 : i32
    %4 = arith.muli %arg0, %c1_i32_3 : i32
    %5 = arith.addi %4, %arg1 : i32
    %6 = arith.minsi %5, %3 : i32
    %c0_i32 = arith.constant 0 : i32
    %c0_i32_4 = arith.constant 0 : i32
    return %6, %c0_i32 : i32, i32
  }
  func.func @transform_1(%arg0: i32, %arg1: i32) -> (i32, i32) {
    %c1_i32 = arith.constant 1 : i32
    %0 = arith.addi %arg0, %c1_i32 : i32
    %c1_i32_0 = arith.constant 1 : i32
    %1 = arith.muli %0, %c1_i32_0 : i32
    %c1_i32_1 = arith.constant 1 : i32
    %2 = arith.minsi %1, %c1_i32_1 : i32
    %c1_i32_2 = arith.constant 1 : i32
    %3 = arith.subi %2, %c1_i32_2 : i32
    %c1_i32_3 = arith.constant 1 : i32
    %4 = arith.muli %arg0, %c1_i32_3 : i32
    %5 = arith.addi %4, %arg1 : i32
    %6 = arith.minsi %5, %3 : i32
    %c0_i32 = arith.constant 0 : i32
    %c0_i32_4 = arith.constant 0 : i32
    return %6, %c0_i32 : i32, i32
  }
  func.func @transform_2(%arg0: i32, %arg1: i32) -> (i32, i32) {
    %c0_i32 = arith.constant 0 : i32
    %c0_i32_0 = arith.constant 0 : i32
    return %arg0, %c0_i32 : i32, i32
  }
  func.func @transform_3(%arg0: i32, %arg1: i32) -> (i32, i32) {
    %c0_i32 = arith.constant 0 : i32
    %c0_i32_0 = arith.constant 0 : i32
    return %arg0, %c0_i32 : i32, i32
  }
}

</mosaic_0001>

<bundles_post_ra>
// kernel: tpu_custom_call.1
= control target key start
LH: loop header
LB: loop body
LE: loop exit
PB: predicated region body
PF: predicated region fallthrough
CT: control target
= control target key end

     0   :  { %9 = vsyncpa [#allocation5], 0  ;;  %s371_s0 = inlined_call_operand.hbm [shape: f32[16,128], index: 0, kind: input, shape index: {}]   ;;  %s372_s1 = inlined_call_operand.hbm [shape: f32[16,128], index: 1, kind: input, shape index: {}]   ;;  %s373_s2 = inlined_call_operand.hbm [shape: f32[1,1], index: 2, kind: output, shape index: {0}]   ;;  %s374_s3 = inlined_call_operand.hbm [shape: f32[1,1], index: 3, kind: output, shape index: {1}]  }
   0x1   :  { %10 = vsyncpa [#allocation8], 0 }
   0x2   :  { %11 = vsyncpa [#allocation6], 0 }
   0x3   :  { %12 = vsyncpa [#allocation11], 0  ;;  %s296_s12 = smov [#allocation4]   ;;  %s224_s16 = scalar_lea.hbm %s371_s0, 256 }
   0x4   :  { %s28_s13 = sshll.u32 %s296_s12, 4  ;;  %p225_p0 = scmp.ne.s32.totalorder %s371_s0, %s224_s16  ;;  %s29_s13 = int_to_ptr.vmem [resolvable:$true] %s28_s13 }
   0x5   :  { %p228_p1 = scmp.lt.u32.totalorder %s224_s16, %s371_s0 }
   0x7   :  { %p230_p2 = pnand %p228_p1, %p225_p0 }
   0x9   :  { %233 = shalt.err (!%p230_p2)
}
   0xa   :  { %s234_s21 = scalar_lea.vmem %s29_s13, 256  ;;  %p239_p4 = scmp.lt.s32.totalorder %s29_s13, %s29_s13 }
   0xb   :  { %p235_p3 = scmp.ne.s32.totalorder %s29_s13, %s234_s21  ;;  %p240_p5 = scmp.lt.s32.totalorder %s234_s21, %s234_s21 }
   0xd   :  { %p241_p6 = por %p240_p5, %p239_p4 }
   0xf   :  { %p242_p7 = pnand %p241_p6, %p235_p3 }
  0x11   :  { %245 = shalt.err (!%p242_p7)
}
  0x12   :  { %s297_s22 = smov 128   ;;  %s298_s23 = smov 8  }
  0x13   :  { %34 = dma.hbm_to_vmem [thread:$0]  %s371_s0, 256, %s29_s13, [#allocation5], %s297_s22, %s297_s22, %s298_s23  }
  0x14   :  { %s299_s26 = smov [#allocation7]   ;;  %s246_s30 = scalar_lea.hbm %s372_s1, 256 }
  0x15   :  { %s50_s27 = sshll.u32 %s299_s26, 4  ;;  %p247_p8 = scmp.ne.s32.totalorder %s372_s1, %s246_s30  ;;  %s51_s27 = int_to_ptr.vmem [resolvable:$true] %s50_s27 }
  0x16   :  { %p250_p9 = scmp.lt.u32.totalorder %s246_s30, %s372_s1 }
  0x18   :  { %p252_p10 = pnand %p250_p9, %p247_p8 }
  0x1a   :  { %255 = shalt.err (!%p252_p10)
}
  0x1b   :  { %s256_s8 = scalar_lea.vmem %s51_s27, 256  ;;  %p261_p12 = scmp.lt.s32.totalorder %s51_s27, %s51_s27 }
  0x1c   :  { %p257_p11 = scmp.ne.s32.totalorder %s51_s27, %s256_s8  ;;  %p262_p13 = scmp.lt.s32.totalorder %s256_s8, %s256_s8 }
  0x1e   :  { %p263_p0 = por %p262_p13, %p261_p12 }
  0x20   :  { %p264_p1 = pnand %p263_p0, %p257_p11 }
  0x22   :  { %267 = shalt.err (!%p264_p1)
}
  0x23   :  { %56 = dma.hbm_to_vmem [thread:$0]  %s372_s1, 256, %s51_s27, [#allocation8], %s297_s22, %s297_s22, %s298_s23  }
  0x24   :  { %288 = dma.done.wait [#allocation5], 256  }
  0x25   :  { %289 = vsyncadd [#allocation5], 4294967040 }
  0x26   :  { %290 = dma.done.wait [#allocation8], 256  }
  0x27   :  { %291 = vsyncadd [#allocation8], 4294967040  ;;  %v89_v0 = vld [vmem:[#allocation4] sm:$0xff]  ;;  %v90_v1 = vld [vmem:[#allocation4 + $0x8] sm:$0xff]  ;;  %v300_v10 = vmov 0.0   ;;  %s268_s12 = scalar_lea.hbm %s373_s2, 16 }
  0x28   :  { %v91_v2 = vld [vmem:[#allocation7] sm:$0xff]  ;;  %v92_v3 = vld [vmem:[#allocation7 + $0x8] sm:$0xff]  ;;  %p269_p2 = scmp.ne.s32.totalorder %s373_s2, %s268_s12  ;;  %p272_p3 = scmp.lt.u32.totalorder %s268_s12, %s373_s2 }
  0x29   :  { %vm97_vm0 = vcmp.ne.f32.partialorder %v91_v2, 0.0  ;;  %v99_v4 = vsub.f32 %v89_v0, %v91_v2  ;;  %vm98_vm1 = vcmp.ne.f32.partialorder %v92_v3, 0.0  ;;  %v100_v5 = vsub.f32 %v90_v1, %v92_v3 }
  0x2a   :  { %v209_v11 = vsel %vm97_vm0, 1.0, %v300_v10  ;;  %v210_v12 = vsel %vm98_vm1, 1.0, %v300_v10  ;;  %p274_p4 = pnand %p272_p3, %p269_p2 }
  0x2b   :  { %v101_v6 = vsel %vm97_vm0, %v99_v4, 0.0  ;;  %v102_v7 = vsel %vm98_vm1, %v100_v5, 0.0  ;;  %v114_v14 = vadd.f32 %v210_v12, %v209_v11 }
  0x2c   :  { %v103_v8 = vmul.f32 %v101_v6, %v101_v6  ;;  %v104_v9 = vmul.f32 %v102_v7, %v102_v7 }
  0x2e   :  { %v110_v13 = vadd.f32 %v104_v9, %v103_v8 }
  0x30   :  { %155 = vadd.xlane.f32.xlu0 %v110_v13 }
  0x34   :  { %167 = vadd.xlane.f32.xlu0 %v114_v14 }
  0xbd   :  { %v156_v15 = vpop.xlane.xlu0 %155 }
  0xbe   :  { %v157_v16 = vrot.slane %v156_v15, 4 }
  0xc0   :  { %v158_v17 = vadd.f32 %v157_v16, %v156_v15 }
  0xc1   :  { %v168_v18 = vpop.xlane.xlu0 %167 }
  0xc2   :  { %v159_v19 = vrot.slane %v158_v17, 2  ;;  %v169_v20 = vrot.slane %v168_v18, 4 }
  0xc4   :  { %v170_v21 = vadd.f32 %v169_v20, %v168_v18  ;;  %v160_v22 = vadd.f32 %v159_v19, %v158_v17 }
  0xc6   :  { %v171_v23 = vrot.slane %v170_v21, 2  ;;  %v161_v24 = vrot.slane %v160_v22, 1 }
  0xc8   :  { %v172_v25 = vadd.f32 %v171_v23, %v170_v21  ;;  %v162_v26 = vadd.f32 %v161_v24, %v160_v22 }
  0xca   :  { %213 = vpush %v162_v26  ;;  %v173_v27 = vrot.slane %v172_v25, 1 }
  0xcc   :  { %v174_v28 = vadd.f32 %v173_v27, %v172_v25 }
  0xce   :  { %215 = vpush %v174_v28 }
  0xfb   :  { %s214_s1 = spop %213 }
  0xfc   :  { %165 = sst [smem:[#allocation9]] %s214_s1 }
  0xfd   :  { %277 = shalt.err (!%p274_p4)
}
  0xfe   :  { %s301_s17 = smov [#allocation9]   ;;  %s278_s23 = scalar_lea.hbm %s374_s3, 16 }
  0xff   :  { %185 = dma.smem_to_hbm %s301_s17, 16, %s373_s2, [#allocation6]  }
 0x100   :  { %s216_s20 = spop %215  ;;  %p279_p5 = scmp.ne.s32.totalorder %s374_s3, %s278_s23 }
 0x101   :  { %177 = sst [smem:[#allocation10]] %s216_s20  ;;  %p282_p6 = scmp.lt.u32.totalorder %s278_s23, %s374_s3 }
 0x103   :  { %p284_p7 = pnand %p282_p6, %p279_p5 }
 0x105   :  { %287 = shalt.err (!%p284_p7)
}
 0x106   :  { %s302_s28 = smov [#allocation10]  }
 0x107   :  { %193 = dma.smem_to_hbm %s302_s28, 16, %s374_s3, [#allocation11]  }
 0x108   :  { %292 = dma.done.wait [#allocation6], 16  }
 0x109   :  { %293 = vsyncadd [#allocation6], 4294967280 }
 0x10a   :  { %294 = dma.done.wait [#allocation11], 16  }
 0x10b   :  { %295 = vsyncadd [#allocation11], 4294967280 }
 0x10c   :  { %200 = sfence }
 0x10d   :  { %201 = vsyncpa [#allocation5], 1 }
 0x10e   :  { %202 = vsyncpa [#allocation8], 1 }
 0x10f   :  { %203 = vsyncpa [#allocation6], 1 }
 0x110   :  { %204 = vsyncpa [#allocation11], 1 }

</bundles_post_ra>
